<compile_context>
chip_gen: v6e
topology: v6e:2x2x1
jax: 0.10.0
libtpu: 0.0.40
codegen_flags: <defaults>
</compile_context>

<pallas_src>
import jax
import jax.numpy as jnp
from jax.experimental import pallas as pl
from jax.experimental.pallas import tpu as pltpu

EB_SIZE = 128
T_HIST = 20                  # hard-coded "20" in the torch module
F_HIS = 2 * EB_SIZE          # 256
HID = 32

# Block sizes (bytes/step ~2-3 MB so they fit the default scoped VMEM on v5e/v6e/v7x and
# amortize the ~0.35us/step pipeline overhead).  On v6e, GROUP_BLOCK can be raised to
# 256-512 together with CompilerParams(vmem_limit_bytes=...).
ROW_BLOCK = 2048             # rows of the flat (B*S*T, F) view per grid step in pass 1
GROUP_BLOCK = 128            # (b,s) groups per grid step in pass 2


def _scores_kernel(x_ref, w1_ref, b1_ref, w2_ref, b2_ref, z_ref):
    # x_ref: (R, F) rows of the flattened history.
    x = x_ref[...]
    hidden = jax.nn.sigmoid(
        jnp.dot(x, w1_ref[...], preferred_element_type=jnp.float32) + b1_ref[...])   # (R, 32)
    # Linear(32 -> 1) as a VPU multiply + lane reduce (avoids an N=1 MXU matmul).
    z = jnp.sum(hidden * w2_ref[...], axis=-1, keepdims=True) + b2_ref[...]          # (R, 1)
    z_ref[...] = z.astype(z_ref.dtype)


def _softmax_wsum_kernel(z_ref, his_ref, out_ref):
    # z_ref: (G, T, 1) raw scores, his_ref: (G, T, F).
    z = z_ref[...].astype(jnp.float32)
    his = his_ref[...]
    m = jnp.max(z, axis=1, keepdims=True)                                     # (G, 1, 1)
    e = jnp.exp(z - m)                                                        # (G, T, 1)
    p = e * pl.reciprocal(jnp.sum(e, axis=1, keepdims=True), approx=False)    # (G, T, 1)
    out = jnp.sum(p * his, axis=1)                                            # (G, F)
    out_ref[...] = out.astype(out_ref.dtype)


def item_attention_nouser(his_outfit_encode, params,
                          row_block=ROW_BLOCK, group_block=GROUP_BLOCK):
    """Pallas forward. his_outfit_encode: (B, S, 20, 256)."""
    w1, b1, w2, b2 = params
    B, S, T, F = his_outfit_encode.shape
    assert T == T_HIST and F == F_HIS
    N = B * S

    # Free row-major views (no HBM copies).
    his_grouped = his_outfit_encode.reshape(N, T, F)
    his_flat = his_outfit_encode.reshape(N * T, F)
    b1r = b1.reshape(1, HID)
    w2row = w2.reshape(1, HID)
    b2r = b2.reshape(1, 1)

    # ---------------- pass 1: per-row attention logits ----------------
    r = min(row_block, N * T)
    z_flat = pl.pallas_call(
        _scores_kernel,
        out_shape=jax.ShapeDtypeStruct((N * T, 1), jnp.float32),
        grid_spec=pltpu.PrefetchScalarGridSpec(
            num_scalar_prefetch=0,
            grid=(pl.cdiv(N * T, r),),
            in_specs=[
                pl.BlockSpec((r, F), lambda i: (i, 0)),        # flat history rows
                pl.BlockSpec((F, HID), lambda i: (0, 0)),      # W1
                pl.BlockSpec((1, HID), lambda i: (0, 0)),      # b1
                pl.BlockSpec((1, HID), lambda i: (0, 0)),      # W2 (as a row)
                pl.BlockSpec((1, 1), lambda i: (0, 0)),        # b2
            ],
            out_specs=pl.BlockSpec((r, 1), lambda i: (i, 0)),
        ),
        compiler_params=pltpu.CompilerParams(dimension_semantics=("parallel",)),
    )(his_flat, w1, b1r, w2row, b2r)

    # ---------------- pass 2: per-group softmax + weighted sum ----------------
    g = min(group_block, N)
    z_grouped = z_flat.reshape(N, T, 1)                        # free reshape
    out = pl.pallas_call(
        _softmax_wsum_kernel,
        out_shape=jax.ShapeDtypeStruct((N, F), his_outfit_encode.dtype),
        grid_spec=pltpu.PrefetchScalarGridSpec(
            num_scalar_prefetch=0,
            grid=(pl.cdiv(N, g),),
            in_specs=[
                pl.BlockSpec((g, T, 1), lambda i: (i, 0, 0)),  # scores
                pl.BlockSpec((g, T, F), lambda i: (i, 0, 0)),  # history
            ],
            out_specs=pl.BlockSpec((g, F), lambda i: (i, 0)),
        ),
        compiler_params=pltpu.CompilerParams(dimension_semantics=("parallel",)),
    )(z_grouped, his_grouped)

    return out.reshape(B, S, 1, F)


def item_attention_nouser_reference(his, params):
    """Pure-JAX mirror of the torch forward."""
    w1, b1, w2, b2 = params
    B, S, T, F = his.shape
    query = his.reshape(-1, T, F)
    h = jax.nn.sigmoid(query @ w1 + b1.reshape(1, 1, HID))
    z = h @ w2.reshape(HID, 1) + b2.reshape(1, 1, 1)          # (B*S, T, 1)
    atten = jax.nn.softmax(z, axis=1)                         # softmax over the 20 items
    score = atten.reshape(B, S, 1, T)
    return jnp.matmul(score, his)                             # (B, S, 1, F)


def init_params(key):
    """Deterministic init matching the torch Linear shapes (stored transposed: in x out)."""
    k1, k2, k3, k4 = jax.random.split(key, 4)
    lim1 = 1.0 / jnp.sqrt(jnp.float32(F_HIS))
    lim2 = 1.0 / jnp.sqrt(jnp.float32(HID))
    w1 = jax.random.uniform(k1, (F_HIS, HID), jnp.float32, -lim1, lim1)
    b1 = jax.random.uniform(k2, (1, HID), jnp.float32, -lim1, lim1)
    w2 = jax.random.uniform(k3, (HID, 1), jnp.float32, -lim2, lim2)
    b2 = jax.random.uniform(k4, (1, 1), jnp.float32, -lim2, lim2)
    return (w1, b1, w2, b2)


if __name__ == "__main__":
    key = jax.random.PRNGKey(0)
    kp, kh = jax.random.split(key, 2)

    B, S = 2, 4
    params = init_params(kp)
    his_outfit_encode = jax.random.normal(kh, (B, S, T_HIST, F_HIS), jnp.float32)

    out = jax.block_until_ready(item_attention_nouser(his_outfit_encode, params))
    ref = jax.block_until_ready(item_attention_nouser_reference(his_outfit_encode, params))

    assert out.shape == (B, S, 1, F_HIS), out.shape
    max_err = float(jnp.max(jnp.abs(out - ref)))
    assert jnp.allclose(out, ref, atol=3e-5, rtol=3e-5), max_err
    print("KERNEL_OK")
</pallas_src>

<mosaic_0001>
module attributes {stable_mosaic.version = 11 : i64} {
  func.func @_scores_kernel(%arg0: i32, %arg1: memref<160x256xf32, #tpu.memory_space<vmem>>, %arg2: memref<256x32xf32, #tpu.memory_space<vmem>>, %arg3: memref<1x32xf32, #tpu.memory_space<vmem>>, %arg4: memref<1x32xf32, #tpu.memory_space<vmem>>, %arg5: memref<1x1xf32, #tpu.memory_space<vmem>>, %arg6: memref<160x1xf32, #tpu.memory_space<vmem>>) attributes {dimension_semantics = [#tpu.dimension_semantics<parallel>], iteration_bounds = array<i64: 1>, scalar_prefetch = 0 : i64, scratch_operands = 0 : i64, tpu.core_type = #tpu.core_type<tc>, window_params = [{transform_indices = @transform_0, window_bounds = array<i64: 160, 256>}, {pipeline_mode = #tpu.pipeline_mode<synchronous>, transform_indices = @transform_1, window_bounds = array<i64: 256, 32>}, {pipeline_mode = #tpu.pipeline_mode<synchronous>, transform_indices = @transform_2, window_bounds = array<i64: 1, 32>}, {pipeline_mode = #tpu.pipeline_mode<synchronous>, transform_indices = @transform_3, window_bounds = array<i64: 1, 32>}, {pipeline_mode = #tpu.pipeline_mode<synchronous>, transform_indices = @transform_4, window_bounds = array<i64: 1, 1>}, {transform_indices = @transform_5, window_bounds = array<i64: 160, 1>}]} {
    %c0 = arith.constant 0 : index
    %c0_0 = arith.constant 0 : index
    %0 = vector.load %arg1[%c0, %c0_0] : memref<160x256xf32, #tpu.memory_space<vmem>>, vector<160x256xf32>
    %c0_1 = arith.constant 0 : index
    %c0_2 = arith.constant 0 : index
    %1 = vector.load %arg2[%c0_1, %c0_2] : memref<256x32xf32, #tpu.memory_space<vmem>>, vector<256x32xf32>
    %cst = arith.constant dense<0.000000e+00> : vector<160x32xf32>
    %2 = tpu.matmul %0, %1, %cst {dimension_numbers = #tpu.dot_dimension_numbers<[1], [0], [0], [1], [0, 0, 1, 1], [], []>} : vector<160x256xf32>, vector<256x32xf32>, vector<160x32xf32> -> vector<160x32xf32>
    %c0_3 = arith.constant 0 : index
    %c0_4 = arith.constant 0 : index
    %3 = vector.load %arg3[%c0_3, %c0_4] : memref<1x32xf32, #tpu.memory_space<vmem>>, vector<1x32xf32>
    %4 = vector.broadcast %3 : vector<1x32xf32> to vector<160x32xf32>
    %5 = arith.addf %2, %4 : vector<160x32xf32>
    %6 = arith.negf %5 : vector<160x32xf32>
    %7 = math.exp %6 : vector<160x32xf32>
    %cst_5 = arith.constant 1.000000e+00 : f32
    %8 = vector.broadcast %cst_5 : f32 to vector<160x32xf32>
    %9 = arith.addf %8, %7 : vector<160x32xf32>
    %10 = arith.divf %8, %9 : vector<160x32xf32>
    %c0_6 = arith.constant 0 : index
    %c0_7 = arith.constant 0 : index
    %11 = vector.load %arg4[%c0_6, %c0_7] : memref<1x32xf32, #tpu.memory_space<vmem>>, vector<1x32xf32>
    %12 = vector.broadcast %11 : vector<1x32xf32> to vector<160x32xf32>
    %13 = arith.mulf %10, %12 : vector<160x32xf32>
    %cst_8 = arith.constant dense<0.000000e+00> : vector<160xf32>
    %14 = vector.multi_reduction <add>, %13, %cst_8 [1] : vector<160x32xf32> to vector<160xf32>
    %15 = vector.shape_cast %14 : vector<160xf32> to vector<160x1xf32>
    %c0_9 = arith.constant 0 : index
    %c0_10 = arith.constant 0 : index
    %16 = vector.load %arg5[%c0_9, %c0_10] : memref<1x1xf32, #tpu.memory_space<vmem>>, vector<1x1xf32>
    %17 = vector.broadcast %16 : vector<1x1xf32> to vector<160x1xf32>
    %18 = arith.addf %15, %17 : vector<160x1xf32>
    %c0_11 = arith.constant 0 : index
    %c0_12 = arith.constant 0 : index
    %19 = vector.load %arg6[%c0_11, %c0_12] : memref<160x1xf32, #tpu.memory_space<vmem>>, vector<160x1xf32>
    tpu.vector_store %arg6[%c0_11, %c0_12], %18 {strides = array<i32>} : memref<160x1xf32, #tpu.memory_space<vmem>>, vector<160x1xf32>,
    return
  }
  func.func @transform_0(%arg0: i32) -> (i32, i32) {
    %c0_i32 = arith.constant 0 : i32
    %c0_i32_0 = arith.constant 0 : i32
    return %arg0, %c0_i32 : i32, i32
  }
  func.func @transform_1(%arg0: i32) -> (i32, i32) {
    %c0_i32 = arith.constant 0 : i32
    %c0_i32_0 = arith.constant 0 : i32
    %c0_i32_1 = arith.constant 0 : i32
    return %c0_i32, %c0_i32_0 : i32, i32
  }
  func.func @transform_2(%arg0: i32) -> (i32, i32) {
    %c0_i32 = arith.constant 0 : i32
    %c0_i32_0 = arith.constant 0 : i32
    %c0_i32_1 = arith.constant 0 : i32
    return %c0_i32, %c0_i32_0 : i32, i32
  }
  func.func @transform_3(%arg0: i32) -> (i32, i32) {
    %c0_i32 = arith.constant 0 : i32
    %c0_i32_0 = arith.constant 0 : i32
    %c0_i32_1 = arith.constant 0 : i32
    return %c0_i32, %c0_i32_0 : i32, i32
  }
  func.func @transform_4(%arg0: i32) -> (i32, i32) {
    %c0_i32 = arith.constant 0 : i32
    %c0_i32_0 = arith.constant 0 : i32
    %c0_i32_1 = arith.constant 0 : i32
    return %c0_i32, %c0_i32_0 : i32, i32
  }
  func.func @transform_5(%arg0: i32) -> (i32, i32) {
    %c0_i32 = arith.constant 0 : i32
    %c0_i32_0 = arith.constant 0 : i32
    return %arg0, %c0_i32 : i32, i32
  }
}

</mosaic_0001>

<bundles_post_ra>
// kernel: tpu_custom_call.1
= control target key start
LH: loop header
LB: loop body
LE: loop exit
PB: predicated region body
PF: predicated region fallthrough
CT: control target
= control target key end

     0   :  { %v694_v0 = vmov 0.0   ;;  %vm413_vm0 = vcmask 261120   ;;  %vm501_vm1 = vcmask 7168   ;;  %s1158_s1 = inlined_call_operand.vmem [shape: f32[256,32], index: 1, kind: input, shape index: {}]   ;;  %s1159_s0 = inlined_call_operand.vmem [shape: f32[160,256], index: 0, kind: input, shape index: {}]   ;;  %s1160_s4 = inlined_call_operand.<no memory space> [shape: f32[1,1], index: 4, kind: input, shape index: {}]   ;;  %s1161_s2 = inlined_call_operand.vmem [shape: f32[1,32], index: 2, kind: input, shape index: {}]   ;;  %s1162_s3 = inlined_call_operand.vmem [shape: f32[1,32], index: 3, kind: input, shape index: {}]   ;;  %s1163_s5 = inlined_call_operand.vmem [shape: f32[160,1], index: 5, kind: output, shape index: {}]  }
   0x1   :  { %101 = vmatprep.subr.mxu0 %v694_v0  ;;  %549 = vmatprep.subr.mxu1 %v694_v0  ;;  %v77_v1 = vld [vmem:[%s1158_s1 + $0x78] sm:$0xff]  ;;  %v76_v2 = vld [vmem:[%s1158_s1 + $0x70] sm:$0xff]  ;;  %v75_v3 = vld [vmem:[%s1158_s1 + $0x68] sm:$0xff] }
   0x2   :  { %102 = vmatpush1.msra.mxu0 %v77_v1  ;;  %581 = vmatpush1.msra.mxu1 %v77_v1  ;;  %v74_v4 = vld [vmem:[%s1158_s1 + $0x60] sm:$0xff]  ;;  %v73_v5 = vld [vmem:[%s1158_s1 + $0x58] sm:$0xff]  ;;  %v72_v6 = vld [vmem:[%s1158_s1 + $0x50] sm:$0xff] }
   0x3   :  { %103 = vmatprep.subr.mxu0 %v694_v0  ;;  %550 = vmatprep.subr.mxu1 %v694_v0  ;;  %v71_v7 = vld [vmem:[%s1158_s1 + $0x48] sm:$0xff]  ;;  %v70_v8 = vld [vmem:[%s1158_s1 + $0x40] sm:$0xff]  ;;  %v69_v9 = vld [vmem:[%s1158_s1 + $0x38] sm:$0xff] }
   0x4   :  { %104 = vmatpush1.msra.mxu0 %v76_v2  ;;  %582 = vmatpush1.msra.mxu1 %v76_v2  ;;  %v68_v10 = vld [vmem:[%s1158_s1 + $0x30] sm:$0xff]  ;;  %v67_v11 = vld [vmem:[%s1158_s1 + $0x28] sm:$0xff]  ;;  %v66_v12 = vld [vmem:[%s1158_s1 + $0x20] sm:$0xff] }
   0x5   :  { %105 = vmatprep.subr.mxu0 %v694_v0  ;;  %551 = vmatprep.subr.mxu1 %v694_v0  ;;  %v65_v13 = vld [vmem:[%s1158_s1 + $0x18] sm:$0xff]  ;;  %v64_v14 = vld [vmem:[%s1158_s1 + $0x10] sm:$0xff]  ;;  %v63_v15 = vld [vmem:[%s1158_s1 + $0x8] sm:$0xff] }
   0x6   :  { %106 = vmatpush1.msra.mxu0 %v75_v3  ;;  %583 = vmatpush1.msra.mxu1 %v75_v3  ;;  %v62_v16 = vld [vmem:[%s1158_s1] sm:$0xff]  ;;  %v93_v17 = vld [vmem:[%s1158_s1 + $0xf8] sm:$0xff]  ;;  %v92_v18 = vld [vmem:[%s1158_s1 + $0xf0] sm:$0xff] }
   0x7   :  { %107 = vmatprep.subr.mxu0 %v694_v0  ;;  %552 = vmatprep.subr.mxu1 %v694_v0  ;;  %v91_v19 = vld [vmem:[%s1158_s1 + $0xe8] sm:$0xff]  ;;  %v90_v20 = vld [vmem:[%s1158_s1 + $0xe0] sm:$0xff]  ;;  %v89_v21 = vld [vmem:[%s1158_s1 + $0xd8] sm:$0xff] }
   0x8   :  { %108 = vmatpush1.msra.mxu0 %v74_v4  ;;  %584 = vmatpush1.msra.mxu1 %v74_v4  ;;  %v88_v22 = vld [vmem:[%s1158_s1 + $0xd0] sm:$0xff]  ;;  %v87_v23 = vld [vmem:[%s1158_s1 + $0xc8] sm:$0xff]  ;;  %v86_v24 = vld [vmem:[%s1158_s1 + $0xc0] sm:$0xff] }
   0x9   :  { %109 = vmatprep.subr.mxu0 %v694_v0  ;;  %553 = vmatprep.subr.mxu1 %v694_v0  ;;  %v85_v25 = vld [vmem:[%s1158_s1 + $0xb8] sm:$0xff]  ;;  %v84_v26 = vld [vmem:[%s1158_s1 + $0xb0] sm:$0xff]  ;;  %v83_v27 = vld [vmem:[%s1158_s1 + $0xa8] sm:$0xff] }
   0xa   :  { %110 = vmatpush1.msra.mxu0 %v73_v5  ;;  %585 = vmatpush1.msra.mxu1 %v73_v5  ;;  %v82_v28 = vld [vmem:[%s1158_s1 + $0xa0] sm:$0xff]  ;;  %v81_v29 = vld [vmem:[%s1158_s1 + $0x98] sm:$0xff]  ;;  %v80_v30 = vld [vmem:[%s1158_s1 + $0x90] sm:$0xff] }
   0xb   :  { %111 = vmatprep.subr.mxu0 %v694_v0  ;;  %554 = vmatprep.subr.mxu1 %v694_v0  ;;  %v79_v31 = vld [vmem:[%s1158_s1 + $0x88] sm:$0xff]  ;;  %v78_v32 = vld [vmem:[%s1158_s1 + $0x80] sm:$0xff]  ;;  %v25_v37 = vld [vmem:[%s1159_s0 + $0x18] sm:$0xff] }
   0xc   :  { %112 = vmatpush1.msra.mxu0 %v72_v6  ;;  %586 = vmatpush1.msra.mxu1 %v72_v6  ;;  %v23_v33 = vld [vmem:[%s1159_s0 + $0x8] sm:$0xff]  ;;  %v22_v35 = vld [vmem:[%s1159_s0] sm:$0xff]  ;;  %v45_v38 = vld [vmem:[%s1159_s0 + $0xb8] sm:$0xff] }
   0xd   :  { %113 = vmatprep.subr.mxu0 %v694_v0  ;;  %555 = vmatprep.subr.mxu1 %v694_v0  ;;  %v43_v34 = vld [vmem:[%s1159_s0 + $0xa8] sm:$0xff]  ;;  %v42_v36 = vld [vmem:[%s1159_s0 + $0xa0] sm:$0xff]  ;;  %v24_v39 = vld [vmem:[%s1159_s0 + $0x10] sm:$0xff] }
   0xe   :  { %114 = vmatpush1.msra.mxu0 %v71_v7  ;;  %587 = vmatpush1.msra.mxu1 %v71_v7  ;;  %v44_v40 = vld [vmem:[%s1159_s0 + $0xb0] sm:$0xff]  ;;  %v27_v41 = vld [vmem:[%s1159_s0 + $0x28] sm:$0xff]  ;;  %v26_v43 = vld [vmem:[%s1159_s0 + $0x20] sm:$0xff] }
   0xf   :  { %115 = vmatprep.subr.mxu0 %v694_v0  ;;  %556 = vmatprep.subr.mxu1 %v694_v0  ;;  %v47_v42 = vld [vmem:[%s1159_s0 + $0xc8] sm:$0xff]  ;;  %v46_v44 = vld [vmem:[%s1159_s0 + $0xc0] sm:$0xff]  ;;  %v29_v45 = vld [vmem:[%s1159_s0 + $0x38] sm:$0xff] }
  0x10   :  { %116 = vmatpush1.msra.mxu0 %v70_v8  ;;  %588 = vmatpush1.msra.mxu1 %v70_v8  ;;  %v49_v46 = vld [vmem:[%s1159_s0 + $0xd8] sm:$0xff]  ;;  %v28_v47 = vld [vmem:[%s1159_s0 + $0x30] sm:$0xff]  ;;  %v31_v49 = vld [vmem:[%s1159_s0 + $0x48] sm:$0xff] }
  0x11   :  { %117 = vmatprep.subr.mxu0 %v694_v0  ;;  %557 = vmatprep.subr.mxu1 %v694_v0  ;;  %v48_v48 = vld [vmem:[%s1159_s0 + $0xd0] sm:$0xff]  ;;  %v51_v50 = vld [vmem:[%s1159_s0 + $0xe8] sm:$0xff]  ;;  %v30_v51 = vld [vmem:[%s1159_s0 + $0x40] sm:$0xff] }
  0x12   :  { %118 = vmatpush1.msra.mxu0 %v69_v9  ;;  %589 = vmatpush1.msra.mxu1 %v69_v9  ;;  %v50_v52 = vld [vmem:[%s1159_s0 + $0xe0] sm:$0xff]  ;;  %v33_v53 = vld [vmem:[%s1159_s0 + $0x58] sm:$0xff]  ;;  %v32_v55 = vld [vmem:[%s1159_s0 + $0x50] sm:$0xff]  ;;  %v10_v9 = vstv %s1160_s4 }
  0x13   :  { %119 = vmatprep.subr.mxu0 %v694_v0  ;;  %558 = vmatprep.subr.mxu1 %v694_v0  ;;  %v53_v54 = vld [vmem:[%s1159_s0 + $0xf8] sm:$0xff]  ;;  %v52_v56 = vld [vmem:[%s1159_s0 + $0xf0] sm:$0xff]  ;;  %v35_v57 = vld [vmem:[%s1159_s0 + $0x68] sm:$0xff]  ;;  %11 = vst [vmem:[#allocation2] sm:$0x1] %v10_v9 }
  0x14   :  { %120 = vmatpush1.msra.mxu0 %v68_v10  ;;  %590 = vmatpush1.msra.mxu1 %v68_v10  ;;  %v55_v58 = vld [vmem:[%s1159_s0 + $0x108] sm:$0xff]  ;;  %v34_v59 = vld [vmem:[%s1159_s0 + $0x60] sm:$0xff]  ;;  %v37_v61 = vld [vmem:[%s1159_s0 + $0x78] sm:$0xff] }
  0x15   :  { %121 = vmatprep.subr.mxu0 %v694_v0  ;;  %559 = vmatprep.subr.mxu1 %v694_v0  ;;  %v54_v60 = vld [vmem:[%s1159_s0 + $0x100] sm:$0xff]  ;;  %v57_v62 = vld [vmem:[%s1159_s0 + $0x118] sm:$0xff]  ;;  %v36_v63 = vld [vmem:[%s1159_s0 + $0x70] sm:$0xff] }
  0x16   :  { %122 = vmatpush1.msra.mxu0 %v67_v11  ;;  %591 = vmatpush1.msra.mxu1 %v67_v11  ;;  %v39_v1 = vld [vmem:[%s1159_s0 + $0x88] sm:$0xff]  ;;  %v38_v3 = vld [vmem:[%s1159_s0 + $0x80] sm:$0xff]  ;;  %v41_v5 = vld [vmem:[%s1159_s0 + $0x98] sm:$0xff] }
  0x17   :  { %123 = vmatprep.subr.mxu0 %v694_v0  ;;  %560 = vmatprep.subr.mxu1 %v694_v0  ;;  %v59_v2 = vld [vmem:[%s1159_s0 + $0x128] sm:$0xff]  ;;  %v58_v4 = vld [vmem:[%s1159_s0 + $0x120] sm:$0xff]  ;;  %v61_v6 = vld [vmem:[%s1159_s0 + $0x138] sm:$0xff] }
  0x18   :  { %124 = vmatpush1.msra.mxu0 %v66_v12  ;;  %592 = vmatpush1.msra.mxu1 %v66_v12  ;;  %v40_v7 = vld [vmem:[%s1159_s0 + $0x90] sm:$0xff]  ;;  %v1011_v10 = vld [vmem:[%s1161_s2] ss:$0 sm:$0xff] }
  0x19   :  { %125 = vmatprep.subr.mxu0 %v694_v0  ;;  %561 = vmatprep.subr.mxu1 %v694_v0  ;;  %v60_v8 = vld [vmem:[%s1159_s0 + $0x130] sm:$0xff] }
  0x1a   :  { %126 = vmatpush1.msra.mxu0 %v65_v13  ;;  %593 = vmatpush1.msra.mxu1 %v65_v13 }
  0x1b   :  { %127 = vmatprep.subr.mxu0 %v694_v0  ;;  %562 = vmatprep.subr.mxu1 %v694_v0 }
  0x1c   :  { %128 = vmatpush1.msra.mxu0 %v64_v14  ;;  %594 = vmatpush1.msra.mxu1 %v64_v14 }
  0x1d   :  { %129 = vmatprep.subr.mxu0 %v694_v0  ;;  %563 = vmatprep.subr.mxu1 %v694_v0 }
  0x1e   :  { %130 = vmatpush1.msra.mxu0 %v63_v15  ;;  %595 = vmatpush1.msra.mxu1 %v63_v15 }
  0x1f   :  { %131 = vmatprep.subr.mxu0 %v694_v0  ;;  %564 = vmatprep.subr.mxu1 %v694_v0 }
  0x20   :  { %132 = vmatpush1.msra.mxu0 %v62_v16  ;;  %596 = vmatpush1.msra.mxu1 %v62_v16 }
  0x21   :  { %133 = vmatprep.subr.mxu0 %v694_v0  ;;  %565 = vmatprep.subr.mxu1 %v694_v0 }
  0x22   :  { %134 = vmatpush2.msra.mxu0 %v93_v17  ;;  %597 = vmatpush2.msra.mxu1 %v93_v17 }
  0x23   :  { %135 = vmatprep.subr.mxu0 %v694_v0  ;;  %566 = vmatprep.subr.mxu1 %v694_v0 }
  0x24   :  { %136 = vmatpush2.msra.mxu0 %v92_v18  ;;  %598 = vmatpush2.msra.mxu1 %v92_v18 }
  0x25   :  { %137 = vmatprep.subr.mxu0 %v694_v0  ;;  %567 = vmatprep.subr.mxu1 %v694_v0 }
  0x26   :  { %138 = vmatpush2.msra.mxu0 %v91_v19  ;;  %599 = vmatpush2.msra.mxu1 %v91_v19 }
  0x27   :  { %139 = vmatprep.subr.mxu0 %v694_v0  ;;  %568 = vmatprep.subr.mxu1 %v694_v0 }
  0x28   :  { %140 = vmatpush2.msra.mxu0 %v90_v20  ;;  %600 = vmatpush2.msra.mxu1 %v90_v20 }
  0x29   :  { %141 = vmatprep.subr.mxu0 %v694_v0  ;;  %569 = vmatprep.subr.mxu1 %v694_v0 }
  0x2a   :  { %142 = vmatpush2.msra.mxu0 %v89_v21  ;;  %601 = vmatpush2.msra.mxu1 %v89_v21 }
  0x2b   :  { %143 = vmatprep.subr.mxu0 %v694_v0  ;;  %570 = vmatprep.subr.mxu1 %v694_v0 }
  0x2c   :  { %144 = vmatpush2.msra.mxu0 %v88_v22  ;;  %602 = vmatpush2.msra.mxu1 %v88_v22 }
  0x2d   :  { %145 = vmatprep.subr.mxu0 %v694_v0  ;;  %571 = vmatprep.subr.mxu1 %v694_v0 }
  0x2e   :  { %146 = vmatpush2.msra.mxu0 %v87_v23  ;;  %603 = vmatpush2.msra.mxu1 %v87_v23 }
  0x2f   :  { %147 = vmatprep.subr.mxu0 %v694_v0  ;;  %572 = vmatprep.subr.mxu1 %v694_v0 }
  0x30   :  { %148 = vmatpush2.msra.mxu0 %v86_v24  ;;  %604 = vmatpush2.msra.mxu1 %v86_v24 }
  0x31   :  { %149 = vmatprep.subr.mxu0 %v694_v0  ;;  %573 = vmatprep.subr.mxu1 %v694_v0 }
  0x32   :  { %150 = vmatpush2.msra.mxu0 %v85_v25  ;;  %605 = vmatpush2.msra.mxu1 %v85_v25 }
  0x33   :  { %151 = vmatprep.subr.mxu0 %v694_v0  ;;  %574 = vmatprep.subr.mxu1 %v694_v0 }
  0x34   :  { %152 = vmatpush2.msra.mxu0 %v84_v26  ;;  %606 = vmatpush2.msra.mxu1 %v84_v26 }
  0x35   :  { %153 = vmatprep.subr.mxu0 %v694_v0  ;;  %575 = vmatprep.subr.mxu1 %v694_v0 }
  0x36   :  { %154 = vmatpush2.msra.mxu0 %v83_v27  ;;  %607 = vmatpush2.msra.mxu1 %v83_v27 }
  0x37   :  { %155 = vmatprep.subr.mxu0 %v694_v0  ;;  %576 = vmatprep.subr.mxu1 %v694_v0 }
  0x38   :  { %156 = vmatpush2.msra.mxu0 %v82_v28  ;;  %608 = vmatpush2.msra.mxu1 %v82_v28 }
  0x39   :  { %157 = vmatprep.subr.mxu0 %v694_v0  ;;  %577 = vmatprep.subr.mxu1 %v694_v0 }
  0x3a   :  { %158 = vmatpush2.msra.mxu0 %v81_v29  ;;  %609 = vmatpush2.msra.mxu1 %v81_v29 }
  0x3b   :  { %159 = vmatprep.subr.mxu0 %v694_v0  ;;  %578 = vmatprep.subr.mxu1 %v694_v0 }
  0x3c   :  { %160 = vmatpush2.msra.mxu0 %v80_v30  ;;  %610 = vmatpush2.msra.mxu1 %v80_v30 }
  0x3d   :  { %161 = vmatprep.subr.mxu0 %v694_v0  ;;  %579 = vmatprep.subr.mxu1 %v694_v0 }
  0x3e   :  { %162 = vmatpush2.msra.mxu0 %v79_v31  ;;  %611 = vmatpush2.msra.mxu1 %v79_v31 }
  0x3f   :  { %163 = vmatprep.subr.mxu0 %v694_v0  ;;  %580 = vmatprep.subr.mxu1 %v694_v0  ;;  %v56_v0 = vld [vmem:[%s1159_s0 + $0x110] sm:$0xff] }
  0x40   :  { %164 = vmatpush2.msra.mxu0 %v78_v32  ;;  %612 = vmatpush2.msra.mxu1 %v78_v32 }
  0x41   :  { %165 = vmatprep.mubr.f32.mxu0 %v23_v33  ;;  %215 = vmatprep.mubr.f32.mxu1 %v43_v34 }
  0x42   :  { %166 = vmatmul.mubr.f32.vlgmr.msra.gmra.mxu0 %v22_v35  ;;  %216 = vmatmul.mubr.f32.vlgmr.msra.gmra.mxu1 %v42_v36 }
  0x43   :  { %170 = vmatprep.mubr.f32.mxu0 %v25_v37  ;;  %220 = vmatprep.mubr.f32.mxu1 %v45_v38 }
  0x46   :  { %171 = vmatmul.mubr.f32.gmra.mxu0 %v24_v39  ;;  %221 = vmatmul.mubr.f32.gmra.mxu1 %v44_v40 }
  0x47   :  { %175 = vmatprep.mubr.f32.mxu0 %v27_v41  ;;  %225 = vmatprep.mubr.f32.mxu1 %v47_v42 }
  0x4a   :  { %176 = vmatmul.mubr.f32.gmra.mxu0 %v26_v43  ;;  %226 = vmatmul.mubr.f32.gmra.mxu1 %v46_v44 }
  0x4b   :  { %180 = vmatprep.mubr.f32.mxu0 %v29_v45  ;;  %230 = vmatprep.mubr.f32.mxu1 %v49_v46 }
  0x4e   :  { %181 = vmatmul.mubr.f32.gmra.mxu0 %v28_v47  ;;  %231 = vmatmul.mubr.f32.gmra.mxu1 %v48_v48 }
  0x4f   :  { %185 = vmatprep.mubr.f32.mxu0 %v31_v49  ;;  %235 = vmatprep.mubr.f32.mxu1 %v51_v50 }
  0x52   :  { %186 = vmatmul.mubr.f32.gmra.mxu0 %v30_v51  ;;  %236 = vmatmul.mubr.f32.gmra.mxu1 %v50_v52 }
  0x53   :  { %190 = vmatprep.mubr.f32.mxu0 %v33_v53  ;;  %240 = vmatprep.mubr.f32.mxu1 %v53_v54 }
  0x56   :  { %191 = vmatmul.mubr.f32.gmra.mxu0 %v32_v55  ;;  %241 = vmatmul.mubr.f32.gmra.mxu1 %v52_v56 }
  0x57   :  { %195 = vmatprep.mubr.f32.mxu0 %v35_v57  ;;  %245 = vmatprep.mubr.f32.mxu1 %v55_v58 }
  0x5a   :  { %196 = vmatmul.mubr.f32.gmra.mxu0 %v34_v59  ;;  %246 = vmatmul.mubr.f32.gmra.mxu1 %v54_v60 }
  0x5b   :  { %200 = vmatprep.mubr.f32.mxu0 %v37_v61  ;;  %250 = vmatprep.mubr.f32.mxu1 %v57_v62 }
  0x5e   :  { %201 = vmatmul.mubr.f32.gmra.mxu0 %v36_v63  ;;  %251 = vmatmul.mubr.f32.gmra.mxu1 %v56_v0 }
  0x5f   :  { %205 = vmatprep.mubr.f32.mxu0 %v39_v1  ;;  %255 = vmatprep.mubr.f32.mxu1 %v59_v2 }
  0x62   :  { %206 = vmatmul.mubr.f32.gmra.mxu0 %v38_v3  ;;  %256 = vmatmul.mubr.f32.gmra.mxu1 %v58_v4 }
  0x63   :  { %210 = vmatprep.mubr.f32.mxu0 %v41_v5  ;;  %260 = vmatprep.mubr.f32.mxu1 %v61_v6 }
  0x66   :  { %211 = vmatmul.mubr.f32.gmra.mxu0 %v40_v7  ;;  %261 = vmatmul.mubr.f32.gmra.mxu1 %v60_v8 }
 0x102   :  { %v167_v11 = vpop.f32.mrf.mxu0  ;;  %v217_v12 = vpop.f32.mrf.mxu1 }
 0x103   :  { %v168_v13 = vadd.f32 %v1011_v10, %v167_v11  ;;  %v218_v14 = vadd.f32 %v1011_v10, %v217_v12 }
 0x104   :  { %v169_v15 = vpop.f32.mrf.mxu0  ;;  %v219_v16 = vpop.f32.mrf.mxu1 }
 0x105   :  { %v527_v17 = vmul.f32 -1.442695, %v168_v13  ;;  %v537_v18 = vmul.f32 -1.442695, %v218_v14 }
 0x106   :  { %v172_v19 = vpop.f32.mrf.mxu0  ;;  %v222_v20 = vpop.f32.mrf.mxu1 }
 0x107   :  { %614 = vpow2.f32 %v527_v17  ;;  %v173_v21 = vadd.f32 %v1011_v10, %v172_v19  ;;  %v223_v22 = vadd.f32 %v1011_v10, %v222_v20 }
 0x108   :  { %616 = vpow2.f32 %v537_v18  ;;  %v174_v23 = vpop.f32.mrf.mxu0  ;;  %v224_v24 = vpop.f32.mrf.mxu1 }
 0x109   :  { %v528_v25 = vmul.f32 -1.442695, %v173_v21  ;;  %v538_v26 = vmul.f32 -1.442695, %v223_v22 }
 0x10a   :  { %v177_v27 = vpop.f32.mrf.mxu0  ;;  %v227_v28 = vpop.f32.mrf.mxu1 }
 0x10b   :  { %618 = vpow2.f32 %v528_v25  ;;  %v178_v29 = vadd.f32 %v1011_v10, %v177_v27  ;;  %v228_v30 = vadd.f32 %v1011_v10, %v227_v28 }
 0x10c   :  { %620 = vpow2.f32 %v538_v26  ;;  %v179_v31 = vpop.f32.mrf.mxu0  ;;  %v229_v32 = vpop.f32.mrf.mxu1 }
 0x10d   :  { %v529_v33 = vmul.f32 -1.442695, %v178_v29  ;;  %v539_v34 = vmul.f32 -1.442695, %v228_v30  ;;  %v1032_v30 = vld [vmem:[%s1162_s3] ss:$0 sm:$0xff] }
 0x10e   :  { %v182_v35 = vpop.f32.mrf.mxu0  ;;  %v232_v36 = vpop.f32.mrf.mxu1 }
 0x10f   :  { %622 = vpow2.f32 %v529_v33  ;;  %v183_v37 = vadd.f32 %v1011_v10, %v182_v35  ;;  %v233_v38 = vadd.f32 %v1011_v10, %v232_v36 }
 0x110   :  { %624 = vpow2.f32 %v539_v34  ;;  %v184_v39 = vpop.f32.mrf.mxu0  ;;  %v234_v40 = vpop.f32.mrf.mxu1 }
 0x111   :  { %v530_v41 = vmul.f32 -1.442695, %v183_v37  ;;  %v540_v42 = vmul.f32 -1.442695, %v233_v38 }
 0x112   :  { %v187_v43 = vpop.f32.mrf.mxu0  ;;  %v237_v44 = vpop.f32.mrf.mxu1 }
 0x113   :  { %626 = vpow2.f32 %v530_v41  ;;  %v188_v45 = vadd.f32 %v1011_v10, %v187_v43  ;;  %v238_v46 = vadd.f32 %v1011_v10, %v237_v44 }
 0x114   :  { %v615_v47 = vpop.eup %614  ;;  %628 = vpow2.f32 %v540_v42  ;;  %v189_v48 = vpop.f32.mrf.mxu0 }
 0x115   :  { %v239_v49 = vpop.f32.mrf.mxu1  ;;  %v617_v50 = vpop.eup %616  ;;  %v326_v51 = vadd.f32 1.0, %v615_v47  ;;  %v531_v52 = vmul.f32 -1.442695, %v188_v45  ;;  %v541_v54 = vmul.f32 -1.442695, %v238_v46 }
 0x116   :  { %v336_v53 = vadd.f32 1.0, %v617_v50  ;;  %v192_v55 = vpop.f32.mrf.mxu0 }
 0x117   :  { %v242_v56 = vpop.f32.mrf.mxu1  ;;  %630 = vrcp.f32 %v326_v51  ;;  %v193_v57 = vadd.f32 %v1011_v10, %v192_v55 }
 0x118   :  { %v243_v58 = vadd.f32 %v1011_v10, %v242_v56  ;;  %v619_v59 = vpop.eup %618  ;;  %632 = vrcp.f32 %v336_v53  ;;  %v194_v60 = vpop.f32.mrf.mxu0 }
 0x119   :  { %v244_v61 = vpop.f32.mrf.mxu1  ;;  %v621_v62 = vpop.eup %620  ;;  %v327_v63 = vadd.f32 1.0, %v619_v59  ;;  %634 = vpow2.f32 %v531_v52  ;;  %v532_v0 = vmul.f32 -1.442695, %v193_v57 }
 0x11a   :  { %v337_v1 = vadd.f32 1.0, %v621_v62  ;;  %636 = vpow2.f32 %v541_v54  ;;  %v542_v2 = vmul.f32 -1.442695, %v243_v58  ;;  %v197_v3 = vpop.f32.mrf.mxu0 }
 0x11b   :  { %v247_v4 = vpop.f32.mrf.mxu1  ;;  %638 = vrcp.f32 %v327_v63  ;;  %v198_v5 = vadd.f32 %v1011_v10, %v197_v3 }
 0x11c   :  { %v248_v6 = vadd.f32 %v1011_v10, %v247_v4  ;;  %v623_v7 = vpop.eup %622  ;;  %640 = vrcp.f32 %v337_v1  ;;  %v199_v8 = vpop.f32.mrf.mxu0 }
 0x11d   :  { %v249_v9 = vpop.f32.mrf.mxu1  ;;  %v625_v11 = vpop.eup %624  ;;  %v328_v12 = vadd.f32 1.0, %v623_v7  ;;  %642 = vpow2.f32 %v532_v0  ;;  %v533_v13 = vmul.f32 -1.442695, %v198_v5 }
 0x11e   :  { %v338_v14 = vadd.f32 1.0, %v625_v11  ;;  %644 = vpow2.f32 %v542_v2  ;;  %v543_v15 = vmul.f32 -1.442695, %v248_v6  ;;  %v202_v16 = vpop.f32.mrf.mxu0 }
 0x11f   :  { %v252_v17 = vpop.f32.mrf.mxu1  ;;  %646 = vrcp.f32 %v328_v12  ;;  %v203_v18 = vadd.f32 %v1011_v10, %v202_v16 }
 0x120   :  { %v253_v19 = vadd.f32 %v1011_v10, %v252_v17  ;;  %v627_v20 = vpop.eup %626  ;;  %648 = vrcp.f32 %v338_v14  ;;  %v204_v21 = vpop.f32.mrf.mxu0 }
 0x121   :  { %v254_v22 = vpop.f32.mrf.mxu1  ;;  %v629_v23 = vpop.eup %628  ;;  %v329_v24 = vadd.f32 1.0, %v627_v20  ;;  %650 = vpow2.f32 %v533_v13  ;;  %v534_v25 = vmul.f32 -1.442695, %v203_v18 }
 0x122   :  { %v339_v26 = vadd.f32 1.0, %v629_v23  ;;  %652 = vpow2.f32 %v543_v15  ;;  %v544_v27 = vmul.f32 -1.442695, %v253_v19  ;;  %v207_v28 = vpop.f32.mrf.mxu0 }
 0x123   :  { %v257_v29 = vpop.f32.mrf.mxu1  ;;  %654 = vrcp.f32 %v329_v24  ;;  %v208_v31 = vadd.f32 %v1011_v10, %v207_v28 }
 0x124   :  { %v258_v32 = vadd.f32 %v1011_v10, %v257_v29  ;;  %v631_v33 = vpop.eup %630  ;;  %656 = vrcp.f32 %v339_v26  ;;  %v209_v34 = vpop.f32.mrf.mxu0 }
 0x125   :  { %v259_v35 = vpop.f32.mrf.mxu1  ;;  %v633_v36 = vpop.eup %632  ;;  %658 = vpow2.f32 %v534_v25  ;;  %v535_v37 = vmul.f32 -1.442695, %v208_v31  ;;  %v393_v39 = vmul.f32 %v631_v33, %v1032_v30 }
 0x126   :  { %v545_v38 = vmul.f32 -1.442695, %v258_v32  ;;  %v635_v40 = vpop.eup %634  ;;  %660 = vpow2.f32 %v544_v27  ;;  %v212_v41 = vpop.f32.mrf.mxu0  ;;  %v403_v43 = vmul.f32 %v633_v36, %v1032_v30 }
 0x127   :  { %v262_v42 = vpop.f32.mrf.mxu1  ;;  %v637_v44 = vpop.eup %636  ;;  %v330_v45 = vadd.f32 1.0, %v635_v40  ;;  %662 = vpow2.f32 %v535_v37  ;;  %v213_v46 = vadd.f32 %v1011_v10, %v212_v41  ;;  %v414_v51 = vsel %vm413_vm0, %v393_v39, 0.0 }
 0x128   :  { %v263_v47 = vadd.f32 %v1011_v10, %v262_v42  ;;  %v639_v48 = vpop.eup %638  ;;  %v340_v49 = vadd.f32 1.0, %v637_v44  ;;  %664 = vpow2.f32 %v545_v38  ;;  %v214_v50 = vpop.f32.mrf.mxu0  ;;  %415 = vadd.xlane.f32.xlu0 %v414_v51  ;;  %v444_v10 = vsel %vm413_vm0, %v403_v43, 0.0 }
 0x129   :  { %v264_v52 = vpop.f32.mrf.mxu1  ;;  %v641_v53 = vpop.eup %640  ;;  %666 = vrcp.f32 %v330_v45  ;;  %v536_v54 = vmul.f32 -1.442695, %v213_v46  ;;  %v394_v63 = vmul.f32 %v639_v48, %v1032_v30 }
 0x12a   :  { %v546_v55 = vmul.f32 -1.442695, %v263_v47  ;;  %v643_v56 = vpop.eup %642  ;;  %668 = vrcp.f32 %v340_v49  ;;  %v404_v57 = vmul.f32 %v641_v53, %v1032_v30 }
 0x12b   :  { %v645_v58 = vpop.eup %644  ;;  %v331_v59 = vadd.f32 1.0, %v643_v56  ;;  %670 = vpow2.f32 %v536_v54  ;;  %v417_v9 = vsel %vm413_vm0, %v394_v63, 0.0 }
 0x12c   :  { %v647_v60 = vpop.eup %646  ;;  %v341_v61 = vadd.f32 1.0, %v645_v58  ;;  %672 = vpow2.f32 %v546_v55  ;;  %v447_v62 = vsel %vm413_vm0, %v404_v57, 0.0  ;;  %445 = vadd.xlane.f32.xlu0 %v444_v10 }
 0x12d   :  { %v649_v0 = vpop.eup %648  ;;  %674 = vrcp.f32 %v331_v59  ;;  %448 = vadd.xlane.f32.xlu1 %v447_v62  ;;  %v395_v1 = vmul.f32 %v647_v60, %v1032_v30 }
 0x12e   :  { %v651_v2 = vpop.eup %650  ;;  %676 = vrcp.f32 %v341_v61  ;;  %v405_v3 = vmul.f32 %v649_v0, %v1032_v30 }
 0x12f   :  { %v653_v4 = vpop.eup %652  ;;  %v332_v5 = vadd.f32 1.0, %v651_v2  ;;  %v420_v6 = vsel %vm413_vm0, %v395_v1, 0.0  ;;  %v548_v1 = vld [vmem:[#allocation2] ss:$0 sm:$0xff] }
 0x130   :  { %v655_v7 = vpop.eup %654  ;;  %v342_v8 = vadd.f32 1.0, %v653_v4  ;;  %418 = vadd.xlane.f32.xlu0 %v417_v9  ;;  %v450_v14 = vsel %vm413_vm0, %v405_v3, 0.0 }
 0x131   :  { %v657_v11 = vpop.eup %656  ;;  %678 = vrcp.f32 %v332_v5  ;;  %421 = vadd.xlane.f32.xlu1 %v420_v6  ;;  %v396_v12 = vmul.f32 %v655_v7, %v1032_v30 }
 0x132   :  { %v659_v13 = vpop.eup %658  ;;  %680 = vrcp.f32 %v342_v8  ;;  %v406_v15 = vmul.f32 %v657_v11, %v1032_v30 }
 0x133   :  { %v661_v16 = vpop.eup %660  ;;  %v333_v17 = vadd.f32 1.0, %v659_v13  ;;  %v423_v18 = vsel %vm413_vm0, %v396_v12, 0.0 }
 0x134   :  { %v663_v19 = vpop.eup %662  ;;  %v343_v20 = vadd.f32 1.0, %v661_v16  ;;  %451 = vadd.xlane.f32.xlu0 %v450_v14  ;;  %v453_v25 = vsel %vm413_vm0, %v406_v15, 0.0 }
 0x135   :  { %v665_v21 = vpop.eup %664  ;;  %682 = vrcp.f32 %v333_v17  ;;  %v334_v22 = vadd.f32 1.0, %v663_v19  ;;  %424 = vadd.xlane.f32.xlu1 %v423_v18 }
 0x136   :  { %v667_v23 = vpop.eup %666  ;;  %684 = vrcp.f32 %v343_v20  ;;  %v344_v24 = vadd.f32 1.0, %v665_v21 }
 0x137   :  { %v669_v26 = vpop.eup %668  ;;  %686 = vrcp.f32 %v334_v22  ;;  %v397_v27 = vmul.f32 %v667_v23, %v1032_v30 }
 0x138   :  { %v671_v28 = vpop.eup %670  ;;  %688 = vrcp.f32 %v344_v24  ;;  %v407_v29 = vmul.f32 %v669_v26, %v1032_v30 }
 0x139   :  { %v673_v31 = vpop.eup %672  ;;  %v335_v32 = vadd.f32 1.0, %v671_v28  ;;  %454 = vadd.xlane.f32.xlu1 %v453_v25  ;;  %v426_v33 = vsel %vm413_vm0, %v397_v27, 0.0 }
 0x13a   :  { %v675_v34 = vpop.eup %674  ;;  %v345_v35 = vadd.f32 1.0, %v673_v31  ;;  %427 = vadd.xlane.f32.xlu0 %v426_v33  ;;  %v456_v38 = vsel %vm413_vm0, %v407_v29, 0.0 }
 0x13b   :  { %v677_v36 = vpop.eup %676  ;;  %690 = vrcp.f32 %v335_v32  ;;  %v398_v37 = vmul.f32 %v675_v34, %v1032_v30 }
 0x13c   :  { %692 = vrcp.f32 %v345_v35  ;;  %v408_v39 = vmul.f32 %v677_v36, %v1032_v30 }
 0x13d   :  { %v429_v40 = vsel %vm413_vm0, %v398_v37, 0.0 }
 0x13e   :  { %v679_v41 = vpop.eup %678  ;;  %430 = vadd.xlane.f32.xlu1 %v429_v40  ;;  %457 = vadd.xlane.f32.xlu0 %v456_v38  ;;  %v459_v43 = vsel %vm413_vm0, %v408_v39, 0.0 }
 0x13f   :  { %v681_v42 = vpop.eup %680  ;;  %v399_v44 = vmul.f32 %v679_v41, %v1032_v30 }
 0x140   :  { %v409_v45 = vmul.f32 %v681_v42, %v1032_v30 }
 0x141   :  { %v432_v46 = vsel %vm413_vm0, %v399_v44, 0.0 }
 0x142   :  { %v683_v47 = vpop.eup %682  ;;  %460 = vadd.xlane.f32.xlu1 %v459_v43  ;;  %433 = vadd.xlane.f32.xlu0 %v432_v46  ;;  %v462_v50 = vsel %vm413_vm0, %v409_v45, 0.0 }
 0x143   :  { %v685_v48 = vpop.eup %684  ;;  %v400_v49 = vmul.f32 %v683_v47, %v1032_v30 }
 0x144   :  { %v687_v51 = vpop.eup %686  ;;  %v410_v52 = vmul.f32 %v685_v48, %v1032_v30 }
 0x145   :  { %v689_v53 = vpop.eup %688  ;;  %v435_v54 = vsel %vm413_vm0, %v400_v49, 0.0  ;;  %v401_v55 = vmul.f32 %v687_v51, %v1032_v30 }
 0x146   :  { %436 = vadd.xlane.f32.xlu1 %v435_v54  ;;  %463 = vadd.xlane.f32.xlu0 %v462_v50  ;;  %v465_v56 = vsel %vm413_vm0, %v410_v52, 0.0  ;;  %v411_v58 = vmul.f32 %v689_v53, %v1032_v30 }
 0x147   :  { %v438_v57 = vsel %vm413_vm0, %v401_v55, 0.0 }
 0x148   :  { %v691_v59 = vpop.eup %690  ;;  %v468_v62 = vsel %vm413_vm0, %v411_v58, 0.0 }
 0x149   :  { %v693_v10 = vpop.eup %692  ;;  %v402_v60 = vmul.f32 %v691_v59, %v1032_v30 }
 0x14a   :  { %466 = vadd.xlane.f32.xlu1 %v465_v56  ;;  %439 = vadd.xlane.f32.xlu0 %v438_v57  ;;  %v412_v63 = vmul.f32 %v693_v10, %v1032_v30 }
 0x14b   :  { %v441_v61 = vsel %vm413_vm0, %v402_v60, 0.0 }
 0x14c   :  { %v471_v0 = vsel %vm413_vm0, %v412_v63, 0.0 }
 0x14e   :  { %442 = vadd.xlane.f32.xlu1 %v441_v61  ;;  %469 = vadd.xlane.f32.xlu0 %v468_v62 }
 0x152   :  { %472 = vadd.xlane.f32.xlu1 %v471_v0 }
 0x1b1   :  { %v416_v2 = vpop.xlane.xlu0 %415 }
 0x1b2   :  { %v481_v3 = vadd.f32 %v548_v1, %v416_v2 }
 0x1b4   :  { %502 = vst.msk [vmem:[%s1163_s5] sm:$0xff] %vm501_vm1, %v481_v3 }
 0x1b5   :  { %v446_v5 = vpop.xlane.xlu0 %445 }
 0x1b6   :  { %v449_v4 = vpop.xlane.xlu1 %448  ;;  %v491_v7 = vadd.f32 %v548_v1, %v446_v5 }
 0x1b7   :  { %v492_v6 = vadd.f32 %v548_v1, %v449_v4 }
 0x1b8   :  { %512 = vst.msk [vmem:[%s1163_s5 + $0x50] sm:$0xff] %vm501_vm1, %v491_v7 }
 0x1b9   :  { %513 = vst.msk [vmem:[%s1163_s5 + $0x58] sm:$0xff] %vm501_vm1, %v492_v6  ;;  %v419_v8 = vpop.xlane.xlu0 %418 }
 0x1ba   :  { %v422_v30 = vpop.xlane.xlu1 %421  ;;  %v482_v11 = vadd.f32 %v548_v1, %v419_v8 }
 0x1bb   :  { %v483_v9 = vadd.f32 %v548_v1, %v422_v30 }
 0x1bc   :  { %503 = vst.msk [vmem:[%s1163_s5 + $0x8] sm:$0xff] %vm501_vm1, %v482_v11 }
 0x1bd   :  { %504 = vst.msk [vmem:[%s1163_s5 + $0x10] sm:$0xff] %vm501_vm1, %v483_v9  ;;  %v452_v13 = vpop.xlane.xlu0 %451 }
 0x1be   :  { %v425_v12 = vpop.xlane.xlu1 %424  ;;  %v493_v15 = vadd.f32 %v548_v1, %v452_v13 }
 0x1bf   :  { %v484_v14 = vadd.f32 %v548_v1, %v425_v12 }
 0x1c0   :  { %514 = vst.msk [vmem:[%s1163_s5 + $0x60] sm:$0xff] %vm501_vm1, %v493_v15 }
 0x1c1   :  { %505 = vst.msk [vmem:[%s1163_s5 + $0x18] sm:$0xff] %vm501_vm1, %v484_v14 }
 0x1c2   :  { %v455_v16 = vpop.xlane.xlu1 %454 }
 0x1c3   :  { %v494_v17 = vadd.f32 %v548_v1, %v455_v16  ;;  %v428_v18 = vpop.xlane.xlu0 %427 }
 0x1c4   :  { %v485_v19 = vadd.f32 %v548_v1, %v428_v18 }
 0x1c5   :  { %515 = vst.msk [vmem:[%s1163_s5 + $0x68] sm:$0xff] %vm501_vm1, %v494_v17 }
 0x1c6   :  { %506 = vst.msk [vmem:[%s1163_s5 + $0x20] sm:$0xff] %vm501_vm1, %v485_v19 }
 0x1c7   :  { %v431_v20 = vpop.xlane.xlu1 %430  ;;  %v458_v21 = vpop.xlane.xlu0 %457 }
 0x1c8   :  { %v486_v22 = vadd.f32 %v548_v1, %v431_v20  ;;  %v495_v23 = vadd.f32 %v548_v1, %v458_v21 }
 0x1ca   :  { %507 = vst.msk [vmem:[%s1163_s5 + $0x28] sm:$0xff] %vm501_vm1, %v486_v22  ;;  %516 = vst.msk [vmem:[%s1163_s5 + $0x70] sm:$0xff] %vm501_vm1, %v495_v23 }
 0x1cb   :  { %v461_v24 = vpop.xlane.xlu1 %460  ;;  %v434_v25 = vpop.xlane.xlu0 %433 }
 0x1cc   :  { %v496_v26 = vadd.f32 %v548_v1, %v461_v24  ;;  %v487_v27 = vadd.f32 %v548_v1, %v434_v25 }
 0x1ce   :  { %517 = vst.msk [vmem:[%s1163_s5 + $0x78] sm:$0xff] %vm501_vm1, %v496_v26  ;;  %508 = vst.msk [vmem:[%s1163_s5 + $0x30] sm:$0xff] %vm501_vm1, %v487_v27 }
 0x1cf   :  { %v437_v28 = vpop.xlane.xlu1 %436  ;;  %v464_v29 = vpop.xlane.xlu0 %463 }
 0x1d0   :  { %v488_v31 = vadd.f32 %v548_v1, %v437_v28  ;;  %v497_v32 = vadd.f32 %v548_v1, %v464_v29 }
 0x1d2   :  { %509 = vst.msk [vmem:[%s1163_s5 + $0x38] sm:$0xff] %vm501_vm1, %v488_v31  ;;  %518 = vst.msk [vmem:[%s1163_s5 + $0x80] sm:$0xff] %vm501_vm1, %v497_v32 }
 0x1d3   :  { %v467_v33 = vpop.xlane.xlu1 %466  ;;  %v440_v34 = vpop.xlane.xlu0 %439 }
 0x1d4   :  { %v498_v35 = vadd.f32 %v548_v1, %v467_v33  ;;  %v489_v36 = vadd.f32 %v548_v1, %v440_v34 }
 0x1d6   :  { %519 = vst.msk [vmem:[%s1163_s5 + $0x88] sm:$0xff] %vm501_vm1, %v498_v35  ;;  %510 = vst.msk [vmem:[%s1163_s5 + $0x40] sm:$0xff] %vm501_vm1, %v489_v36 }
 0x1d7   :  { %v443_v37 = vpop.xlane.xlu1 %442  ;;  %v470_v38 = vpop.xlane.xlu0 %469 }
 0x1d8   :  { %v490_v39 = vadd.f32 %v548_v1, %v443_v37  ;;  %v499_v40 = vadd.f32 %v548_v1, %v470_v38 }
 0x1da   :  { %511 = vst.msk [vmem:[%s1163_s5 + $0x48] sm:$0xff] %vm501_vm1, %v490_v39  ;;  %520 = vst.msk [vmem:[%s1163_s5 + $0x90] sm:$0xff] %vm501_vm1, %v499_v40 }
 0x1db   :  { %v473_v41 = vpop.xlane.xlu1 %472 }
 0x1dc   :  { %v500_v42 = vadd.f32 %v548_v1, %v473_v41 }
 0x1de   :  { %521 = vst.msk [vmem:[%s1163_s5 + $0x98] sm:$0xff] %vm501_vm1, %v500_v42 }

</bundles_post_ra>
